<compile_context>
chip_gen: v7x
topology: tpu7x:2x2x1
jax: 0.10.0
libtpu: 0.0.40
codegen_flags: <defaults>
</compile_context>

<pallas_src>
import jax
import jax.numpy as jnp
from jax import lax
from jax.experimental import pallas as pl
from jax.experimental.pallas import tpu as pltpu  # noqa: F401  (TPU backend / future tiling knobs)


# ----------------------------------------------------------------------------
# Pallas kernel (fully fused forward)
# ----------------------------------------------------------------------------
def _full_spec(shape):
    # Full-array block (exempt from the (8,128) divisibility rule), grid=(1,).
    return pl.BlockSpec(shape, lambda i, _n=len(shape): (0,) * _n)


def _make_fused_gcn_kernel(num_layers, in_channels, hidden_channels, num_graphs,
                           nodes_per_graph):
    """Builds the fused forward kernel.  nodes_per_graph=None -> dense pool-matrix path."""
    use_pool_matrix = nodes_per_graph is None

    def kernel(*refs):
        it = iter(refs)
        x_ref = next(it)                                   # [N, C_in] f32
        a_ref = next(it)                                   # [N, N]    bf16 normalized adjacency
        p_ref = next(it) if use_pool_matrix else None      # [G, N]    bf16 one-hot pool matrix
        conv_refs = [(next(it), next(it)) for _ in range(num_layers)]
        w1_ref = next(it)
        b1_ref = next(it)
        gamma_ref = next(it)
        beta_ref = next(it)
        w2_ref = next(it)
        b2_ref = next(it)
        o_ref = next(it)                                   # [G, out]  f32

        a = a_ref[...]                                     # bf16, resident for all layers
        x = x_ref[...].astype(jnp.float32)
        # Running accumulator for z @ W1 where z = concat(pooled_0..pooled_{L-1}).
        h1 = jnp.zeros((num_graphs, hidden_channels), jnp.float32)

        for l, (w_ref, b_ref) in enumerate(conv_refs):
            w = w_ref[...].astype(jnp.bfloat16)
            xb = x.astype(jnp.bfloat16)
            if l == 0 and in_channels < hidden_channels:
                # (A @ X) @ W : cheaper when the input width is narrower than hidden.
                ax = jnp.dot(a, xb, preferred_element_type=jnp.float32)
                agg = jnp.dot(ax.astype(jnp.bfloat16), w,
                              preferred_element_type=jnp.float32)
            else:
                xw = jnp.dot(xb, w, preferred_element_type=jnp.float32)
                agg = jnp.dot(a, xw.astype(jnp.bfloat16),
                              preferred_element_type=jnp.float32)
            x = jnp.maximum(agg + b_ref[...], 0.0)         # f32 bias + ReLU (VPU)

            if use_pool_matrix:
                # General global_add_pool (ragged batches): one-hot matrix matmul.
                pooled = jnp.dot(p_ref[...], x.astype(jnp.bfloat16),
                                 preferred_element_type=jnp.float32)
            else:
                # Contiguous equal-size graphs: exact f32 sublane reduce (no MXU).
                pooled = x.reshape(num_graphs, nodes_per_graph,
                                   hidden_channels).sum(axis=1)

            w1_l = w1_ref[l * hidden_channels:(l + 1) * hidden_channels, :]
            h1 = h1 + jnp.dot(pooled.astype(jnp.bfloat16),
                              w1_l.astype(jnp.bfloat16),
                              preferred_element_type=jnp.float32)

        # MLP head: Linear -> BatchNorm1d (training batch stats) -> ReLU -> Linear.
        h = h1 + b1_ref[...]
        mean = jnp.mean(h, axis=0, keepdims=True)
        var = jnp.maximum(jnp.mean(h * h, axis=0, keepdims=True) - mean * mean, 0.0)
        hn = (h - mean) * lax.rsqrt(var + 1e-5) * gamma_ref[...] + beta_ref[...]
        hn = jnp.maximum(hn, 0.0)
        o_ref[...] = (jnp.dot(hn.astype(jnp.bfloat16),
                              w2_ref[...].astype(jnp.bfloat16),
                              preferred_element_type=jnp.float32) + b2_ref[...])

    return kernel


def gcn_classic_forward(x, a_norm, params, num_graphs, *,
                        nodes_per_graph=None, pool_mat=None):
    """Fused GCN_Classic forward.

    Exactly one of `nodes_per_graph` (batch is contiguous equal-size node blocks)
    or `pool_mat` (general dense one-hot [G, N] pooling matrix) must be given.
    """
    assert (nodes_per_graph is None) != (pool_mat is None), (
        "pass nodes_per_graph (contiguous equal-size graphs) OR pool_mat (general)")
    x = x.astype(jnp.float32)
    _, in_channels = x.shape
    hidden_channels = params["convs"][0][0].shape[1]
    num_layers = len(params["convs"])
    out_channels = params["mlp"][4].shape[1]

    kernel = _make_fused_gcn_kernel(num_layers, in_channels, hidden_channels,
                                    num_graphs, nodes_per_graph)

    inputs = [x, a_norm.astype(jnp.bfloat16)]      # bf16 halves A_norm DMA bytes
    if pool_mat is not None:
        inputs.append(pool_mat.astype(jnp.bfloat16))
    for w, b in params["convs"]:
        inputs.extend([w, b])
    inputs.extend(params["mlp"])

    return pl.pallas_call(
        kernel,
        grid=(1,),
        in_specs=[_full_spec(a.shape) for a in inputs],
        out_specs=_full_spec((num_graphs, out_channels)),
        out_shape=jax.ShapeDtypeStruct((num_graphs, out_channels), jnp.float32),
    )(*inputs)


# ----------------------------------------------------------------------------
# Graph-structure preprocessing (hoisted out of the per-forward hot path)
# ----------------------------------------------------------------------------
def build_gcn_norm_adj(edge_index, num_nodes):
    """Dense D^-1/2 A D^-1/2 with add_self_loops=False (PyG gcn_norm semantics)."""
    src, dst = edge_index[0], edge_index[1]
    a = jnp.zeros((num_nodes, num_nodes), jnp.float32).at[dst, src].add(1.0)
    deg = a.sum(axis=1)                                   # scatter(edge_weight, col=dst)
    dis = jnp.where(deg > 0.0, lax.rsqrt(jnp.maximum(deg, 1e-30)), 0.0)
    return dis[:, None] * a * dis[None, :]


def build_pool_matrix(batch, num_graphs):
    return (batch[None, :] == jnp.arange(num_graphs)[:, None]).astype(jnp.float32)


# ----------------------------------------------------------------------------
# Pure-JAX references
# ----------------------------------------------------------------------------
def reference_forward_f32(x, edge_index, batch, params, num_graphs):
    """Original full-f32 math (module semantics) — precision baseline."""
    x = x.astype(jnp.float32)
    a_norm = build_gcn_norm_adj(edge_index, x.shape[0])
    pool_mat = build_pool_matrix(batch, num_graphs)
    pools = []
    for (w, b) in params["convs"]:
        x = jnp.maximum(a_norm @ (x @ w) + b, 0.0)
        pools.append(pool_mat @ x)
    z = jnp.concatenate(pools, axis=1)
    w1, b1, gamma, beta, w2, b2 = params["mlp"]
    h = z @ w1 + b1
    mean = h.mean(axis=0, keepdims=True)
    var = ((h - mean) ** 2).mean(axis=0, keepdims=True)
    h = jnp.maximum((h - mean) / jnp.sqrt(var + 1e-5) * gamma + beta, 0.0)
    return h @ w2 + b2


def reference_forward_matched(x, a_norm, params, num_graphs, nodes_per_graph):
    """Mirror of the kernel's exact computation graph (bf16 MXU operands, f32 accum)."""
    x = x.astype(jnp.float32)
    a = a_norm.astype(jnp.bfloat16)
    in_channels = x.shape[1]
    hidden = params["convs"][0][0].shape[1]
    w1, b1, gamma, beta, w2, b2 = params["mlp"]
    h1 = jnp.zeros((num_graphs, hidden), jnp.float32)
    for l, (w, b) in enumerate(params["convs"]):
        wb = w.astype(jnp.bfloat16)
        xb = x.astype(jnp.bfloat16)
        if l == 0 and in_channels < hidden:
            ax = jnp.dot(a, xb, preferred_element_type=jnp.float32)
            agg = jnp.dot(ax.astype(jnp.bfloat16), wb, preferred_element_type=jnp.float32)
        else:
            xw = jnp.dot(xb, wb, preferred_element_type=jnp.float32)
            agg = jnp.dot(a, xw.astype(jnp.bfloat16), preferred_element_type=jnp.float32)
        x = jnp.maximum(agg + b, 0.0)
        pooled = x.reshape(num_graphs, nodes_per_graph, hidden).sum(axis=1)
        w1_l = w1[l * hidden:(l + 1) * hidden, :].astype(jnp.bfloat16)
        h1 = h1 + jnp.dot(pooled.astype(jnp.bfloat16), w1_l,
                          preferred_element_type=jnp.float32)
    h = h1 + b1
    mean = jnp.mean(h, axis=0, keepdims=True)
    var = jnp.maximum(jnp.mean(h * h, axis=0, keepdims=True) - mean * mean, 0.0)
    hn = jnp.maximum((h - mean) * lax.rsqrt(var + 1e-5) * gamma + beta, 0.0)
    return jnp.dot(hn.astype(jnp.bfloat16), w2.astype(jnp.bfloat16),
                   preferred_element_type=jnp.float32) + b2


# ----------------------------------------------------------------------------
# Deterministic parameter init (shapes from GCN_Classic.__init__)
# ----------------------------------------------------------------------------
def init_params(key, in_channels, hidden_channels, out_channels, num_layers):
    params = {"convs": []}
    c_in = in_channels
    for _ in range(num_layers):
        key, k_w = jax.random.split(key)
        scale = jnp.sqrt(2.0 / (c_in + hidden_channels))          # glorot-ish
        w = jax.random.normal(k_w, (c_in, hidden_channels), jnp.float32) * scale
        b = jnp.zeros((1, hidden_channels), jnp.float32)           # GCNConv zeros bias
        params["convs"].append((w, b))
        c_in = hidden_channels

    d_in = hidden_channels * num_layers
    key, k1, k2 = jax.random.split(key, 3)
    w1 = jax.random.normal(k1, (d_in, hidden_channels), jnp.float32) / jnp.sqrt(d_in)
    b1 = jnp.zeros((1, hidden_channels), jnp.float32)
    gamma = jnp.ones((1, hidden_channels), jnp.float32)
    beta = jnp.zeros((1, hidden_channels), jnp.float32)
    w2 = jax.random.normal(k2, (hidden_channels, out_channels), jnp.float32) / jnp.sqrt(
        hidden_channels)
    b2 = jnp.zeros((1, out_channels), jnp.float32)
    params["mlp"] = (w1, b1, gamma, beta, w2, b2)
    return params


# ----------------------------------------------------------------------------
if __name__ == "__main__":
    # Small synthetic graph batch: 8 graphs x 8 nodes = 64 nodes.
    NUM_NODES = 64
    NUM_EDGES = 256
    IN_CHANNELS = 16
    HIDDEN_CHANNELS = 32
    OUT_CHANNELS = 8
    NUM_LAYERS = 3
    NUM_GRAPHS = 8
    NODES_PER_GRAPH = NUM_NODES // NUM_GRAPHS

    key = jax.random.PRNGKey(0)
    key, kx, ke = jax.random.split(key, 3)

    x = jax.random.normal(kx, (NUM_NODES, IN_CHANNELS), jnp.float32)
    # Random directed edges plus reversed copies to make the graph undirected-ish.
    e_half = jax.random.randint(ke, (2, NUM_EDGES // 2), 0, NUM_NODES, jnp.int32)
    edge_index = jnp.concatenate([e_half, e_half[::-1]], axis=1)       # [2, E]
    batch = jnp.repeat(jnp.arange(NUM_GRAPHS, dtype=jnp.int32),
                       NODES_PER_GRAPH)                                 # [N]

    params = init_params(key, IN_CHANNELS, HIDDEN_CHANNELS, OUT_CHANNELS, NUM_LAYERS)

    # Graph-structure tensors built ONCE, outside the per-forward hot path.
    a_norm = build_gcn_norm_adj(edge_index, NUM_NODES)
    pool_mat = build_pool_matrix(batch, NUM_GRAPHS)

    # Fast path: contiguous equal-size graphs -> reshape-sum pooling, no pool matrix.
    out = jax.block_until_ready(
        gcn_classic_forward(x, a_norm, params, NUM_GRAPHS,
                            nodes_per_graph=NODES_PER_GRAPH))
    assert out.shape == (NUM_GRAPHS, OUT_CHANNELS), out.shape

    # General fallback path (arbitrary `batch`): dense one-hot pool matrix.
    out_dense = jax.block_until_ready(
        gcn_classic_forward(x, a_norm, params, NUM_GRAPHS, pool_mat=pool_mat))

    ref_match = jax.block_until_ready(
        reference_forward_matched(x, a_norm, params, NUM_GRAPHS, NODES_PER_GRAPH))
    ref_f32 = jax.block_until_ready(
        reference_forward_f32(x, edge_index, batch, params, NUM_GRAPHS))

    # Kernel matches the identically-quantized (bf16-MXU) reference tightly.
    assert jnp.allclose(out, ref_match, rtol=1e-3, atol=1e-3), (
        f"max abs err vs matched ref {float(jnp.max(jnp.abs(out - ref_match)))}")
    # bf16 MXU operands vs pure-f32 math: expect ~1e-2-class relative error.
    assert jnp.allclose(out, ref_f32, rtol=1e-1, atol=1e-1), (
        f"max abs err vs f32 ref {float(jnp.max(jnp.abs(out - ref_f32)))}")
    assert jnp.allclose(out_dense, ref_f32, rtol=1e-1, atol=1e-1), (
        f"(dense pool path) max abs err vs f32 ref "
        f"{float(jnp.max(jnp.abs(out_dense - ref_f32)))}")

    print("KERNEL_OK")
</pallas_src>

<mosaic_0001>
module attributes {stable_mosaic.version = 11 : i64} {
  func.func @kernel(%arg0: i32, %arg1: memref<64x16xf32, #tpu.memory_space<vmem>>, %arg2: memref<64x64xbf16, #tpu.memory_space<vmem>>, %arg3: memref<16x32xf32, #tpu.memory_space<vmem>>, %arg4: memref<1x32xf32, #tpu.memory_space<vmem>>, %arg5: memref<32x32xf32, #tpu.memory_space<vmem>>, %arg6: memref<1x32xf32, #tpu.memory_space<vmem>>, %arg7: memref<32x32xf32, #tpu.memory_space<vmem>>, %arg8: memref<1x32xf32, #tpu.memory_space<vmem>>, %arg9: memref<96x32xf32, #tpu.memory_space<vmem>>, %arg10: memref<1x32xf32, #tpu.memory_space<vmem>>, %arg11: memref<1x32xf32, #tpu.memory_space<vmem>>, %arg12: memref<1x32xf32, #tpu.memory_space<vmem>>, %arg13: memref<32x8xf32, #tpu.memory_space<vmem>>, %arg14: memref<1x8xf32, #tpu.memory_space<vmem>>, %arg15: memref<8x8xf32, #tpu.memory_space<vmem>>) attributes {dimension_semantics = [#tpu.dimension_semantics<arbitrary>], iteration_bounds = array<i64: 1>, scalar_prefetch = 0 : i64, scratch_operands = 0 : i64, tpu.core_type = #tpu.core_type<tc>, window_params = [{pipeline_mode = #tpu.pipeline_mode<synchronous>, transform_indices = @transform_0, window_bounds = array<i64: 64, 16>}, {pipeline_mode = #tpu.pipeline_mode<synchronous>, transform_indices = @transform_1, window_bounds = array<i64: 64, 64>}, {pipeline_mode = #tpu.pipeline_mode<synchronous>, transform_indices = @transform_2, window_bounds = array<i64: 16, 32>}, {pipeline_mode = #tpu.pipeline_mode<synchronous>, transform_indices = @transform_3, window_bounds = array<i64: 1, 32>}, {pipeline_mode = #tpu.pipeline_mode<synchronous>, transform_indices = @transform_4, window_bounds = array<i64: 32, 32>}, {pipeline_mode = #tpu.pipeline_mode<synchronous>, transform_indices = @transform_5, window_bounds = array<i64: 1, 32>}, {pipeline_mode = #tpu.pipeline_mode<synchronous>, transform_indices = @transform_6, window_bounds = array<i64: 32, 32>}, {pipeline_mode = #tpu.pipeline_mode<synchronous>, transform_indices = @transform_7, window_bounds = array<i64: 1, 32>}, {pipeline_mode = #tpu.pipeline_mode<synchronous>, transform_indices = @transform_8, window_bounds = array<i64: 96, 32>}, {pipeline_mode = #tpu.pipeline_mode<synchronous>, transform_indices = @transform_9, window_bounds = array<i64: 1, 32>}, {pipeline_mode = #tpu.pipeline_mode<synchronous>, transform_indices = @transform_10, window_bounds = array<i64: 1, 32>}, {pipeline_mode = #tpu.pipeline_mode<synchronous>, transform_indices = @transform_11, window_bounds = array<i64: 1, 32>}, {pipeline_mode = #tpu.pipeline_mode<synchronous>, transform_indices = @transform_12, window_bounds = array<i64: 32, 8>}, {pipeline_mode = #tpu.pipeline_mode<synchronous>, transform_indices = @transform_13, window_bounds = array<i64: 1, 8>}, {pipeline_mode = #tpu.pipeline_mode<synchronous>, transform_indices = @transform_14, window_bounds = array<i64: 8, 8>}]} {
    %c0 = arith.constant 0 : index
    %c0_0 = arith.constant 0 : index
    %0 = vector.load %arg2[%c0, %c0_0] : memref<64x64xbf16, #tpu.memory_space<vmem>>, vector<64x64xbf16>
    %c0_1 = arith.constant 0 : index
    %c0_2 = arith.constant 0 : index
    %1 = vector.load %arg1[%c0_1, %c0_2] : memref<64x16xf32, #tpu.memory_space<vmem>>, vector<64x16xf32>
    %cst = arith.constant 0.000000e+00 : f32
    %2 = vector.broadcast %cst : f32 to vector<8x32xf32>
    %c0_3 = arith.constant 0 : index
    %c0_4 = arith.constant 0 : index
    %3 = vector.load %arg3[%c0_3, %c0_4] : memref<16x32xf32, #tpu.memory_space<vmem>>, vector<16x32xf32>
    %4 = arith.truncf %3 : vector<16x32xf32> to vector<16x32xbf16>
    %5 = arith.truncf %1 : vector<64x16xf32> to vector<64x16xbf16>
    %cst_5 = arith.constant dense<0.000000e+00> : vector<64x16xf32>
    %6 = tpu.matmul %0, %5, %cst_5 {dimension_numbers = #tpu.dot_dimension_numbers<[1], [0], [0], [1], [0, 0, 1, 1], [], []>} : vector<64x64xbf16>, vector<64x16xbf16>, vector<64x16xf32> -> vector<64x16xf32>
    %7 = arith.truncf %6 : vector<64x16xf32> to vector<64x16xbf16>
    %cst_6 = arith.constant dense<0.000000e+00> : vector<64x32xf32>
    %8 = tpu.matmul %7, %4, %cst_6 {dimension_numbers = #tpu.dot_dimension_numbers<[1], [0], [0], [1], [0, 0, 1, 1], [], []>} : vector<64x16xbf16>, vector<16x32xbf16>, vector<64x32xf32> -> vector<64x32xf32>
    %c0_7 = arith.constant 0 : index
    %c0_8 = arith.constant 0 : index
    %9 = vector.load %arg4[%c0_7, %c0_8] : memref<1x32xf32, #tpu.memory_space<vmem>>, vector<1x32xf32>
    %10 = vector.broadcast %9 : vector<1x32xf32> to vector<64x32xf32>
    %11 = arith.addf %8, %10 : vector<64x32xf32>
    %cst_9 = arith.constant 0.000000e+00 : f32
    %12 = vector.broadcast %cst_9 : f32 to vector<64x32xf32>
    %13 = arith.maximumf %11, %12 : vector<64x32xf32>
    %14 = vector.shape_cast %13 : vector<64x32xf32> to vector<8x8x32xf32>
    %cst_10 = arith.constant dense<0.000000e+00> : vector<8x32xf32>
    %15 = vector.multi_reduction <add>, %14, %cst_10 [1] : vector<8x8x32xf32> to vector<8x32xf32>
    %c0_11 = arith.constant 0 : index
    %c0_12 = arith.constant 0 : index
    %16 = vector.load %arg9[%c0_11, %c0_12] : memref<96x32xf32, #tpu.memory_space<vmem>>, vector<32x32xf32>
    %17 = arith.truncf %15 : vector<8x32xf32> to vector<8x32xbf16>
    %18 = arith.truncf %16 : vector<32x32xf32> to vector<32x32xbf16>
    %cst_13 = arith.constant dense<0.000000e+00> : vector<8x32xf32>
    %19 = tpu.matmul %17, %18, %cst_13 {dimension_numbers = #tpu.dot_dimension_numbers<[1], [0], [0], [1], [0, 0, 1, 1], [], []>} : vector<8x32xbf16>, vector<32x32xbf16>, vector<8x32xf32> -> vector<8x32xf32>
    %20 = arith.addf %2, %19 : vector<8x32xf32>
    %c0_14 = arith.constant 0 : index
    %c0_15 = arith.constant 0 : index
    %21 = vector.load %arg5[%c0_14, %c0_15] : memref<32x32xf32, #tpu.memory_space<vmem>>, vector<32x32xf32>
    %22 = arith.truncf %21 : vector<32x32xf32> to vector<32x32xbf16>
    %23 = arith.truncf %13 : vector<64x32xf32> to vector<64x32xbf16>
    %cst_16 = arith.constant dense<0.000000e+00> : vector<64x32xf32>
    %24 = tpu.matmul %23, %22, %cst_16 {dimension_numbers = #tpu.dot_dimension_numbers<[1], [0], [0], [1], [0, 0, 1, 1], [], []>} : vector<64x32xbf16>, vector<32x32xbf16>, vector<64x32xf32> -> vector<64x32xf32>
    %25 = arith.truncf %24 : vector<64x32xf32> to vector<64x32xbf16>
    %cst_17 = arith.constant dense<0.000000e+00> : vector<64x32xf32>
    %26 = tpu.matmul %0, %25, %cst_17 {dimension_numbers = #tpu.dot_dimension_numbers<[1], [0], [0], [1], [0, 0, 1, 1], [], []>} : vector<64x64xbf16>, vector<64x32xbf16>, vector<64x32xf32> -> vector<64x32xf32>
    %c0_18 = arith.constant 0 : index
    %c0_19 = arith.constant 0 : index
    %27 = vector.load %arg6[%c0_18, %c0_19] : memref<1x32xf32, #tpu.memory_space<vmem>>, vector<1x32xf32>
    %28 = vector.broadcast %27 : vector<1x32xf32> to vector<64x32xf32>
    %29 = arith.addf %26, %28 : vector<64x32xf32>
    %cst_20 = arith.constant 0.000000e+00 : f32
    %30 = vector.broadcast %cst_20 : f32 to vector<64x32xf32>
    %31 = arith.maximumf %29, %30 : vector<64x32xf32>
    %32 = vector.shape_cast %31 : vector<64x32xf32> to vector<8x8x32xf32>
    %cst_21 = arith.constant dense<0.000000e+00> : vector<8x32xf32>
    %33 = vector.multi_reduction <add>, %32, %cst_21 [1] : vector<8x8x32xf32> to vector<8x32xf32>
    %c32 = arith.constant 32 : index
    %c0_22 = arith.constant 0 : index
    %34 = vector.load %arg9[%c32, %c0_22] : memref<96x32xf32, #tpu.memory_space<vmem>>, vector<32x32xf32>
    %35 = arith.truncf %33 : vector<8x32xf32> to vector<8x32xbf16>
    %36 = arith.truncf %34 : vector<32x32xf32> to vector<32x32xbf16>
    %cst_23 = arith.constant dense<0.000000e+00> : vector<8x32xf32>
    %37 = tpu.matmul %35, %36, %cst_23 {dimension_numbers = #tpu.dot_dimension_numbers<[1], [0], [0], [1], [0, 0, 1, 1], [], []>} : vector<8x32xbf16>, vector<32x32xbf16>, vector<8x32xf32> -> vector<8x32xf32>
    %38 = arith.addf %20, %37 : vector<8x32xf32>
    %c0_24 = arith.constant 0 : index
    %c0_25 = arith.constant 0 : index
    %39 = vector.load %arg7[%c0_24, %c0_25] : memref<32x32xf32, #tpu.memory_space<vmem>>, vector<32x32xf32>
    %40 = arith.truncf %39 : vector<32x32xf32> to vector<32x32xbf16>
    %41 = arith.truncf %31 : vector<64x32xf32> to vector<64x32xbf16>
    %cst_26 = arith.constant dense<0.000000e+00> : vector<64x32xf32>
    %42 = tpu.matmul %41, %40, %cst_26 {dimension_numbers = #tpu.dot_dimension_numbers<[1], [0], [0], [1], [0, 0, 1, 1], [], []>} : vector<64x32xbf16>, vector<32x32xbf16>, vector<64x32xf32> -> vector<64x32xf32>
    %43 = arith.truncf %42 : vector<64x32xf32> to vector<64x32xbf16>
    %cst_27 = arith.constant dense<0.000000e+00> : vector<64x32xf32>
    %44 = tpu.matmul %0, %43, %cst_27 {dimension_numbers = #tpu.dot_dimension_numbers<[1], [0], [0], [1], [0, 0, 1, 1], [], []>} : vector<64x64xbf16>, vector<64x32xbf16>, vector<64x32xf32> -> vector<64x32xf32>
    %c0_28 = arith.constant 0 : index
    %c0_29 = arith.constant 0 : index
    %45 = vector.load %arg8[%c0_28, %c0_29] : memref<1x32xf32, #tpu.memory_space<vmem>>, vector<1x32xf32>
    %46 = vector.broadcast %45 : vector<1x32xf32> to vector<64x32xf32>
    %47 = arith.addf %44, %46 : vector<64x32xf32>
    %cst_30 = arith.constant 0.000000e+00 : f32
    %48 = vector.broadcast %cst_30 : f32 to vector<64x32xf32>
    %49 = arith.maximumf %47, %48 : vector<64x32xf32>
    %50 = vector.shape_cast %49 : vector<64x32xf32> to vector<8x8x32xf32>
    %cst_31 = arith.constant dense<0.000000e+00> : vector<8x32xf32>
    %51 = vector.multi_reduction <add>, %50, %cst_31 [1] : vector<8x8x32xf32> to vector<8x32xf32>
    %c64 = arith.constant 64 : index
    %c0_32 = arith.constant 0 : index
    %52 = vector.load %arg9[%c64, %c0_32] : memref<96x32xf32, #tpu.memory_space<vmem>>, vector<32x32xf32>
    %53 = arith.truncf %51 : vector<8x32xf32> to vector<8x32xbf16>
    %54 = arith.truncf %52 : vector<32x32xf32> to vector<32x32xbf16>
    %cst_33 = arith.constant dense<0.000000e+00> : vector<8x32xf32>
    %55 = tpu.matmul %53, %54, %cst_33 {dimension_numbers = #tpu.dot_dimension_numbers<[1], [0], [0], [1], [0, 0, 1, 1], [], []>} : vector<8x32xbf16>, vector<32x32xbf16>, vector<8x32xf32> -> vector<8x32xf32>
    %56 = arith.addf %38, %55 : vector<8x32xf32>
    %c0_34 = arith.constant 0 : index
    %c0_35 = arith.constant 0 : index
    %57 = vector.load %arg10[%c0_34, %c0_35] : memref<1x32xf32, #tpu.memory_space<vmem>>, vector<1x32xf32>
    %58 = vector.broadcast %57 : vector<1x32xf32> to vector<8x32xf32>
    %59 = arith.addf %56, %58 : vector<8x32xf32>
    %cst_36 = arith.constant dense<0.000000e+00> : vector<32xf32>
    %60 = vector.multi_reduction <add>, %59, %cst_36 [0] : vector<8x32xf32> to vector<32xf32>
    %61 = vector.shape_cast %60 : vector<32xf32> to vector<1x32xf32>
    %cst_37 = arith.constant 8.000000e+00 : f32
    %62 = vector.broadcast %cst_37 : f32 to vector<1x32xf32>
    %63 = arith.divf %61, %62 : vector<1x32xf32>
    %64 = arith.mulf %59, %59 : vector<8x32xf32>
    %cst_38 = arith.constant dense<0.000000e+00> : vector<32xf32>
    %65 = vector.multi_reduction <add>, %64, %cst_38 [0] : vector<8x32xf32> to vector<32xf32>
    %66 = vector.shape_cast %65 : vector<32xf32> to vector<1x32xf32>
    %cst_39 = arith.constant 8.000000e+00 : f32
    %67 = vector.broadcast %cst_39 : f32 to vector<1x32xf32>
    %68 = arith.divf %66, %67 : vector<1x32xf32>
    %69 = arith.mulf %63, %63 : vector<1x32xf32>
    %70 = arith.subf %68, %69 : vector<1x32xf32>
    %cst_40 = arith.constant 0.000000e+00 : f32
    %71 = vector.broadcast %cst_40 : f32 to vector<1x32xf32>
    %72 = arith.maximumf %70, %71 : vector<1x32xf32>
    %73 = vector.broadcast %63 : vector<1x32xf32> to vector<8x32xf32>
    %74 = arith.subf %59, %73 : vector<8x32xf32>
    %cst_41 = arith.constant 9.99999974E-6 : f32
    %75 = vector.broadcast %cst_41 : f32 to vector<1x32xf32>
    %76 = arith.addf %72, %75 : vector<1x32xf32>
    %77 = math.rsqrt %76 : vector<1x32xf32>
    %78 = vector.broadcast %77 : vector<1x32xf32> to vector<8x32xf32>
    %79 = arith.mulf %74, %78 : vector<8x32xf32>
    %c0_42 = arith.constant 0 : index
    %c0_43 = arith.constant 0 : index
    %80 = vector.load %arg11[%c0_42, %c0_43] : memref<1x32xf32, #tpu.memory_space<vmem>>, vector<1x32xf32>
    %81 = vector.broadcast %80 : vector<1x32xf32> to vector<8x32xf32>
    %82 = arith.mulf %79, %81 : vector<8x32xf32>
    %c0_44 = arith.constant 0 : index
    %c0_45 = arith.constant 0 : index
    %83 = vector.load %arg12[%c0_44, %c0_45] : memref<1x32xf32, #tpu.memory_space<vmem>>, vector<1x32xf32>
    %84 = vector.broadcast %83 : vector<1x32xf32> to vector<8x32xf32>
    %85 = arith.addf %82, %84 : vector<8x32xf32>
    %cst_46 = arith.constant 0.000000e+00 : f32
    %86 = vector.broadcast %cst_46 : f32 to vector<8x32xf32>
    %87 = arith.maximumf %85, %86 : vector<8x32xf32>
    %88 = arith.truncf %87 : vector<8x32xf32> to vector<8x32xbf16>
    %c0_47 = arith.constant 0 : index
    %c0_48 = arith.constant 0 : index
    %89 = vector.load %arg13[%c0_47, %c0_48] : memref<32x8xf32, #tpu.memory_space<vmem>>, vector<32x8xf32>
    %90 = arith.truncf %89 : vector<32x8xf32> to vector<32x8xbf16>
    %cst_49 = arith.constant dense<0.000000e+00> : vector<8x8xf32>
    %91 = tpu.matmul %88, %90, %cst_49 {dimension_numbers = #tpu.dot_dimension_numbers<[1], [0], [0], [1], [0, 0, 1, 1], [], []>} : vector<8x32xbf16>, vector<32x8xbf16>, vector<8x8xf32> -> vector<8x8xf32>
    %c0_50 = arith.constant 0 : index
    %c0_51 = arith.constant 0 : index
    %92 = vector.load %arg14[%c0_50, %c0_51] : memref<1x8xf32, #tpu.memory_space<vmem>>, vector<1x8xf32>
    %93 = vector.broadcast %92 : vector<1x8xf32> to vector<8x8xf32>
    %94 = arith.addf %91, %93 : vector<8x8xf32>
    %c0_52 = arith.constant 0 : index
    %c0_53 = arith.constant 0 : index
    %95 = vector.load %arg15[%c0_52, %c0_53] : memref<8x8xf32, #tpu.memory_space<vmem>>, vector<8x8xf32>
    tpu.vector_store %arg15[%c0_52, %c0_53], %94 {strides = array<i32>} : memref<8x8xf32, #tpu.memory_space<vmem>>, vector<8x8xf32>,
    return
  }
  func.func @transform_0(%arg0: i32) -> (i32, i32) {
    %c0_i32 = arith.constant 0 : i32
    %c0_i32_0 = arith.constant 0 : i32
    %c0_i32_1 = arith.constant 0 : i32
    return %c0_i32, %c0_i32_0 : i32, i32
  }
  func.func @transform_1(%arg0: i32) -> (i32, i32) {
    %c0_i32 = arith.constant 0 : i32
    %c0_i32_0 = arith.constant 0 : i32
    %c0_i32_1 = arith.constant 0 : i32
    return %c0_i32, %c0_i32_0 : i32, i32
  }
  func.func @transform_2(%arg0: i32) -> (i32, i32) {
    %c0_i32 = arith.constant 0 : i32
    %c0_i32_0 = arith.constant 0 : i32
    %c0_i32_1 = arith.constant 0 : i32
    return %c0_i32, %c0_i32_0 : i32, i32
  }
  func.func @transform_3(%arg0: i32) -> (i32, i32) {
    %c0_i32 = arith.constant 0 : i32
    %c0_i32_0 = arith.constant 0 : i32
    %c0_i32_1 = arith.constant 0 : i32
    return %c0_i32, %c0_i32_0 : i32, i32
  }
  func.func @transform_4(%arg0: i32) -> (i32, i32) {
    %c0_i32 = arith.constant 0 : i32
    %c0_i32_0 = arith.constant 0 : i32
    %c0_i32_1 = arith.constant 0 : i32
    return %c0_i32, %c0_i32_0 : i32, i32
  }
  func.func @transform_5(%arg0: i32) -> (i32, i32) {
    %c0_i32 = arith.constant 0 : i32
    %c0_i32_0 = arith.constant 0 : i32
    %c0_i32_1 = arith.constant 0 : i32
    return %c0_i32, %c0_i32_0 : i32, i32
  }
  func.func @transform_6(%arg0: i32) -> (i32, i32) {
    %c0_i32 = arith.constant 0 : i32
    %c0_i32_0 = arith.constant 0 : i32
    %c0_i32_1 = arith.constant 0 : i32
    return %c0_i32, %c0_i32_0 : i32, i32
  }
  func.func @transform_7(%arg0: i32) -> (i32, i32) {
    %c0_i32 = arith.constant 0 : i32
    %c0_i32_0 = arith.constant 0 : i32
    %c0_i32_1 = arith.constant 0 : i32
    return %c0_i32, %c0_i32_0 : i32, i32
  }
  func.func @transform_8(%arg0: i32) -> (i32, i32) {
    %c0_i32 = arith.constant 0 : i32
    %c0_i32_0 = arith.constant 0 : i32
    %c0_i32_1 = arith.constant 0 : i32
    return %c0_i32, %c0_i32_0 : i32, i32
  }
  func.func @transform_9(%arg0: i32) -> (i32, i32) {
    %c0_i32 = arith.constant 0 : i32
    %c0_i32_0 = arith.constant 0 : i32
    %c0_i32_1 = arith.constant 0 : i32
    return %c0_i32, %c0_i32_0 : i32, i32
  }
  func.func @transform_10(%arg0: i32) -> (i32, i32) {
    %c0_i32 = arith.constant 0 : i32
    %c0_i32_0 = arith.constant 0 : i32
    %c0_i32_1 = arith.constant 0 : i32
    return %c0_i32, %c0_i32_0 : i32, i32
  }
  func.func @transform_11(%arg0: i32) -> (i32, i32) {
    %c0_i32 = arith.constant 0 : i32
    %c0_i32_0 = arith.constant 0 : i32
    %c0_i32_1 = arith.constant 0 : i32
    return %c0_i32, %c0_i32_0 : i32, i32
  }
  func.func @transform_12(%arg0: i32) -> (i32, i32) {
    %c0_i32 = arith.constant 0 : i32
    %c0_i32_0 = arith.constant 0 : i32
    %c0_i32_1 = arith.constant 0 : i32
    return %c0_i32, %c0_i32_0 : i32, i32
  }
  func.func @transform_13(%arg0: i32) -> (i32, i32) {
    %c0_i32 = arith.constant 0 : i32
    %c0_i32_0 = arith.constant 0 : i32
    %c0_i32_1 = arith.constant 0 : i32
    return %c0_i32, %c0_i32_0 : i32, i32
  }
  func.func @transform_14(%arg0: i32) -> (i32, i32) {
    %c0_i32 = arith.constant 0 : i32
    %c0_i32_0 = arith.constant 0 : i32
    %c0_i32_1 = arith.constant 0 : i32
    return %c0_i32, %c0_i32_0 : i32, i32
  }
}

</mosaic_0001>

<bundles_post_ra>
// kernel: tpu_custom_call.1
= control target key start
LH: loop header
LB: loop body
LE: loop exit
PB: predicated region body
PF: predicated region fallthrough
CT: control target
= control target key end

     0   :  { %vm92_vm0 = vcmask 523264   ;;  %s1730_s0 = inlined_call_operand.vmem [shape: f32[64,16], index: 0, kind: input, shape index: {}]   ;;  %s1731_s1 = inlined_call_operand.vmem [shape: bf16[64,64], index: 1, kind: input, shape index: {}]   ;;  %s1732_s2 = inlined_call_operand.vmem [shape: f32[16,32], index: 2, kind: input, shape index: {}]   ;;  %s1733_s3 = inlined_call_operand.vmem [shape: f32[1,32], index: 3, kind: input, shape index: {}]   ;;  %s1734_s4 = inlined_call_operand.vmem [shape: f32[32,32], index: 4, kind: input, shape index: {}]   ;;  %s1735_s5 = inlined_call_operand.vmem [shape: f32[1,32], index: 5, kind: input, shape index: {}]   ;;  %s1736_s6 = inlined_call_operand.vmem [shape: f32[32,32], index: 6, kind: input, shape index: {}]   ;;  %s1737_s7 = inlined_call_operand.vmem [shape: f32[1,32], index: 7, kind: input, shape index: {}]   ;;  %s1738_s8 = inlined_call_operand.vmem [shape: f32[96,32], index: 8, kind: input, shape index: {}]   ;;  %s1739_s9 = inlined_call_operand.vmem [shape: f32[1,32], index: 9, kind: input, shape index: {}]   ;;  %s1740_s10 = inlined_call_operand.vmem [shape: f32[1,32], index: 10, kind: input, shape index: {}]   ;;  %s1741_s11 = inlined_call_operand.vmem [shape: f32[1,32], index: 11, kind: input, shape index: {}]   ;;  %s1742_s12 = inlined_call_operand.vmem [shape: f32[32,8], index: 12, kind: input, shape index: {}]   ;;  %s1743_s13 = inlined_call_operand.vmem [shape: f32[1,8], index: 13, kind: input, shape index: {}]   ;;  %s1744_s14 = inlined_call_operand.hbm [shape: f32[8,8], index: 14, kind: output, shape index: {}]  }
   0x1   :  { %v57_v0 = vld [vmem:[%s1730_s0] sm:$0xff]  ;;  %v58_v1 = vld [vmem:[%s1730_s0 + $0x8] sm:$0xff]  ;;  %v59_v2 = vld [vmem:[%s1730_s0 + $0x10] sm:$0xff] }
   0x2   :  { %v68_v3 = vpack.c.bf16 %v58_v1, %v57_v0  ;;  %v60_v4 = vld [vmem:[%s1730_s0 + $0x18] sm:$0xff]  ;;  %v61_v6 = vld [vmem:[%s1730_s0 + $0x20] sm:$0xff]  ;;  %v62_v7 = vld [vmem:[%s1730_s0 + $0x28] sm:$0xff] }
   0x3   :  { %v69_v5 = vpack.c.bf16 %v60_v4, %v59_v2  ;;  %v1490_v8 = vld [vmem:[%s1731_s1] sm:$0xff]   ;;  %v70_v9 = vpack.c.bf16 %v62_v7, %v61_v6  ;;  %v63_v10 = vld [vmem:[%s1730_s0 + $0x30] sm:$0xff]  ;;  %v64_v11 = vld [vmem:[%s1730_s0 + $0x38] sm:$0xff] }
   0x4   :  { %1244 = vmatprep.subr.bf16.mxu0 %v68_v3  ;;  %1252 = vmatprep.mubr.msk.bf16.mxu0 %vm92_vm0, %v1490_v8 }
   0x5   :  { %1245 = vmatpush3.bf16.msra.mxu0 %v68_v3 }
   0x6   :  { %1246 = vmatprep.subr.bf16.mxu0 %v69_v5 }
   0x7   :  { %19 = vsyncpa [#allocation3], 0  ;;  %v71_v12 = vpack.c.bf16 %v64_v11, %v63_v10  ;;  %v1503_v13 = vld [vmem:[%s1731_s1 + $0x8] sm:$0xff]   ;;  %v1508_v14 = vld [vmem:[%s1731_s1 + $0x10] sm:$0xff]   ;;  %vm181_vm1 = vcmask 130048   ;;  %vm267_vm2 = vcmask 261120  }
   0x8   :  { %v1517_v15 = vld [vmem:[%s1731_s1 + $0x18] sm:$0xff]   ;;  %v65_v16 = vld [vmem:[%s1732_s2] sm:$0xff]  ;;  %v66_v17 = vld [vmem:[%s1732_s2 + $0x8] sm:$0xff]  ;;  %vm595_vm3 = vcmask 1041409   ;;  %vm597_vm4 = vcmask 1042434   ;;  %vm599_vm5 = vcmask 1043459  }
   0x9   :  { %1247 = vmatpush3.bf16.msra.mxu0 %v69_v5  ;;  %v67_v18 = vpack.c.bf16 %v66_v17, %v65_v16  ;;  %v338_v19 = vld [vmem:[%s1734_s4] sm:$0xff]  ;;  %v339_v20 = vld [vmem:[%s1734_s4 + $0x8] sm:$0xff]  ;;  %v340_v34 = vld [vmem:[%s1734_s4 + $0x10] sm:$0xff]  ;;  %vm601_vm6 = vcmask 1044484   ;;  %vm603_vm7 = vcmask 1045509   ;;  %vm605_vm8 = vcmask 1046534  }
   0xa   :  { %1248 = vmatprep.subr.bf16.mxu0 %v70_v9  ;;  %v342_v21 = vpack.c.bf16 %v339_v20, %v338_v19  ;;  %v341_v35 = vld [vmem:[%s1734_s4 + $0x18] sm:$0xff]  ;;  %v1160_v37 = vld [vmem:[%s1733_s3] ss:$0 sm:$0xff]  ;;  %vm607_vm9 = vcmask 1047559   ;;  %vm1392_vm10 = vmmov 0   ;;  %s1393_s16 = smov [#allocation2]  }
   0xb   :  { %1260 = vmatprep.subr.bf16.mxu1 %v67_v18  ;;  %v343_v36 = vpack.c.bf16 %v341_v35, %v340_v34  ;;  %s1144_s17 = sshll.u32 %s1393_s16, 4  ;;  %vm1136_vm11 = vcmask 64512   ;;  %s1145_s17 = int_to_ptr.vmem [resolvable:$true] %s1144_s17 }
   0xc   :  { %1261 = vmatpush3.bf16.msra.mxu1 %v67_v18  ;;  %p1372_p1 = scmp.lt.s32.totalorder %s1145_s17, %s1145_s17 }
   0xd   :  { %1249 = vmatpush3.bf16.msra.mxu0 %v70_v9  ;;  %1270 = vmatprep.subr.bf16.mxu1 %v342_v21 }
   0xe   :  { %1250 = vmatprep.subr.bf16.mxu0 %v71_v12 }
  0x11   :  { %1251 = vmatpush3.bf16.msra.mxu0 %v71_v12 }
  0x14   :  { %1253 = vmatmul.mubr.msk.bf16.vlgmr.msra.gmra.mrb[0].mxu0 %vm92_vm0, %v1503_v13 }
  0x15   :  { %1256 = vmatprep.mubr.msk.bf16.mxu0 %vm92_vm0, %v1508_v14 }
  0x1c   :  { %1257 = vmatmul.mubr.msk.bf16.gmra.mrb[4].mxu0 %vm92_vm0, %v1517_v15 }
  0x1d   :  { %1290 = vmatprep.mubr.msk.bf16.mxu0 %vm92_vm0, %v1490_v8 }
  0xe7   :  { %v1254_v22 = vpop.f32.mrb[0].mxu0 }
  0xe8   :  { %v139_v23 = vpop.f32.mrb[1].mxu0 }
  0xe9   :  { %v1255_v24 = vpop.f32.mrb[2].mxu0 }
  0xea   :  { %v171_v25 = vpack.c.bf16 %v1255_v24, %v1254_v22  ;;  %v142_v26 = vpop.f32.mrb[3].mxu0 }
  0xeb   :  { %v170_v27 = vpack.c.bf16 %v142_v26, %v139_v23 }
  0xed   :  { %1262 = vmatprep.mubr.msk.bf16.mxu1 %vm181_vm1, %v170_v27 }
  0xee   :  { %1263 = vmatmul.mubr.msk.bf16.vlgmr.msra.gmra.mrb[0].mxu1 %vm181_vm1, %v171_v25 }
  0xef   :  { %v1258_v28 = vpop.f32.mrb[4].mxu0  ;;  %1271 = vmatpush3.bf16.msra.mxu1 %v342_v21 }
  0xf0   :  { %v155_v29 = vpop.f32.mrb[5].mxu0  ;;  %1272 = vmatprep.subr.bf16.mxu1 %v343_v36 }
  0xf1   :  { %v1259_v30 = vpop.f32.mrb[6].mxu0 }
  0xf2   :  { %v173_v31 = vpack.c.bf16 %v1259_v30, %v1258_v28  ;;  %v158_v32 = vpop.f32.mrb[7].mxu0 }
  0xf3   :  { %v172_v33 = vpack.c.bf16 %v158_v32, %v155_v29  ;;  %1273 = vmatpush3.bf16.msra.mxu1 %v343_v36 }
  0xf5   :  { %1266 = vmatprep.mubr.msk.bf16.mxu1 %vm181_vm1, %v172_v33 }
  0xf6   :  { %1267 = vmatmul.mubr.msk.bf16.gmra.mrb[4].mxu1 %vm181_vm1, %v173_v31 }
 0x1c1   :  { %v1264_v38 = vpop.f32.mrb[0].mxu1 }
 0x1c2   :  { %v237_v39 = vadd.f32 %v1264_v38, %v1160_v37  ;;  %v228_v40 = vpop.f32.mrb[1].mxu1 }
 0x1c3   :  { %v229_v41 = vadd.f32 %v1160_v37, %v228_v40  ;;  %v1265_v42 = vpop.f32.mrb[2].mxu1 }
 0x1c4   :  { %v261_v43 = vmax.f32 %v237_v39, 0.0  ;;  %v240_v44 = vadd.f32 %v1265_v42, %v1160_v37  ;;  %v231_v45 = vpop.f32.mrb[3].mxu1 }
 0x1c5   :  { %v259_v46 = vmax.f32 %v229_v41, 0.0  ;;  %v232_v47 = vadd.f32 %v1160_v37, %v231_v45 }
 0x1c6   :  { %v282_v48 = vsel %vm267_vm2, %v261_v43, 0.0  ;;  %v262_v49 = vmax.f32 %v240_v44, 0.0 }
 0x1c7   :  { %v283_v50 = vrot.slane %v282_v48, 4  ;;  %v268_v51 = vsel %vm267_vm2, %v259_v46, 0.0  ;;  %v260_v52 = vmax.f32 %v232_v47, 0.0 }
 0x1c8   :  { %v269_v53 = vrot.slane %v268_v51, 4  ;;  %v289_v54 = vsel %vm267_vm2, %v262_v49, 0.0  ;;  %v345_v55 = vpack.c.bf16 %v262_v49, %v261_v43 }
 0x1c9   :  { %v284_v56 = vadd.f32 %v283_v50, %v282_v48  ;;  %v290_v57 = vrot.slane %v289_v54, 4  ;;  %v275_v58 = vsel %vm267_vm2, %v260_v52, 0.0  ;;  %v344_v59 = vpack.c.bf16 %v260_v52, %v259_v46  ;;  %v1268_v60 = vpop.f32.mrb[4].mxu1 }
 0x1ca   :  { %v270_v61 = vadd.f32 %v269_v53, %v268_v51  ;;  %v276_v62 = vrot.slane %v275_v58, 4  ;;  %v253_v63 = vadd.f32 %v1268_v60, %v1160_v37  ;;  %v244_v0 = vpop.f32.mrb[5].mxu1 }
 0x1cb   :  { %v285_v1 = vrot.slane %v284_v56, 2  ;;  %v291_v2 = vadd.f32 %v290_v57, %v289_v54  ;;  %v245_v3 = vadd.f32 %v1160_v37, %v244_v0  ;;  %v1269_v4 = vpop.f32.mrb[6].mxu1  ;;  %1274 = vmatprep.mubr.msk.bf16.mxu1 %vm267_vm2, %v344_v59 }
 0x1cc   :  { %v271_v5 = vrot.slane %v270_v61, 2  ;;  %v277_v6 = vadd.f32 %v276_v62, %v275_v58  ;;  %v265_v7 = vmax.f32 %v253_v63, 0.0  ;;  %v256_v9 = vadd.f32 %v1269_v4, %v1160_v37  ;;  %v247_v10 = vpop.f32.mrb[7].mxu1  ;;  %1275 = vmatmul.mubr.msk.bf16.vlgmr.msra.gmra.mrb[8].mxu1 %vm267_vm2, %v345_v55 }
 0x1cd   :  { %v286_v11 = vadd.f32 %v285_v1, %v284_v56  ;;  %v292_v12 = vrot.slane %v291_v2, 2  ;;  %v263_v16 = vmax.f32 %v245_v3, 0.0  ;;  %v248_v17 = vadd.f32 %v1160_v37, %v247_v10 }
 0x1ce   :  { %v272_v18 = vadd.f32 %v271_v5, %v270_v61  ;;  %v278_v19 = vrot.slane %v277_v6, 2  ;;  %v310_v20 = vsel %vm267_vm2, %v265_v7, 0.0  ;;  %v266_v21 = vmax.f32 %v256_v9, 0.0 }
 0x1cf   :  { %v287_v22 = vrot.slane %v286_v11, 1  ;;  %v293_v23 = vadd.f32 %v292_v12, %v291_v2  ;;  %v311_v24 = vrot.slane %v310_v20, 4  ;;  %v296_v25 = vsel %vm267_vm2, %v263_v16, 0.0 }
 0x1d0   :  { %v273_v26 = vrot.slane %v272_v18, 1  ;;  %v279_v27 = vadd.f32 %v278_v19, %v277_v6  ;;  %v297_v28 = vrot.slane %v296_v25, 4  ;;  %v317_v29 = vsel %vm267_vm2, %v266_v21, 0.0 }
 0x1d1   :  { %v288_v30 = vadd.f32 %v287_v22, %v286_v11  ;;  %v294_v31 = vrot.slane %v293_v23, 1  ;;  %v312_v32 = vadd.f32 %v311_v24, %v310_v20  ;;  %v318_v33 = vrot.slane %v317_v29, 4 }
 0x1d2   :  { %v274_v34 = vadd.f32 %v273_v26, %v272_v18  ;;  %v280_v35 = vrot.slane %v279_v27, 1  ;;  %v298_v36 = vadd.f32 %v297_v28, %v296_v25  ;;  %v347_v37 = vpack.c.bf16 %v266_v21, %v265_v7 }
 0x1d3   :  { %v295_v38 = vadd.f32 %v294_v31, %v293_v23  ;;  %v313_v39 = vrot.slane %v312_v32, 2  ;;  %v319_v40 = vadd.f32 %v318_v33, %v317_v29  ;;  %v264_v44 = vmax.f32 %v248_v17, 0.0 }
 0x1d4   :  { %v328_v41 = vpack.c.bf16 %v274_v34, %v274_v34  ;;  %v281_v42 = vadd.f32 %v280_v35, %v279_v27  ;;  %v299_v43 = vrot.slane %v298_v36, 2  ;;  %v330_v45 = vpack.c.bf16 %v288_v30, %v288_v30 }
 0x1d5   :  { %v331_v46 = vpack.c.bf16 %v295_v38, %v295_v38  ;;  %v320_v47 = vrot.slane %v319_v40, 2  ;;  %v314_v49 = vadd.f32 %v313_v39, %v312_v32  ;;  %v303_v51 = vsel %vm267_vm2, %v264_v44, 0.0  ;;  %v721_v38 = vld [vmem:[%s1736_s6 + $0x8] sm:$0xff] }
 0x1d6   :  { %v329_v48 = vpack.c.bf16 %v281_v42, %v281_v42  ;;  %v300_v50 = vadd.f32 %v299_v43, %v298_v36  ;;  %v304_v53 = vrot.slane %v303_v51, 4  ;;  %v661_v54 = vunpack.c.l.b16 %v328_v41  ;;  %v723_v41 = vld [vmem:[%s1736_s6 + $0x18] sm:$0xff]  ;;  %v565_v43 = vld [vmem:[%s1738_s8 + $0x20] sm:$0xff] }
 0x1d7   :  { %v321_v52 = vadd.f32 %v320_v47, %v319_v40  ;;  %v346_v57 = vpack.c.bf16 %v264_v44, %v263_v16  ;;  %v663_v58 = vunpack.c.l.b16 %v330_v45  ;;  %v664_v60 = vunpack.c.l.b16 %v331_v46  ;;  %v722_v40 = vld [vmem:[%s1736_s6 + $0x10] sm:$0xff]  ;;  %v566_v44 = vld [vmem:[%s1738_s8 + $0x28] sm:$0xff] }
 0x1d8   :  { %v662_v55 = vunpack.c.l.b16 %v329_v48  ;;  %v301_v56 = vrot.slane %v300_v50, 1  ;;  %v305_v59 = vadd.f32 %v304_v53, %v303_v51  ;;  %v315_v62 = vrot.slane %v314_v49, 1  ;;  %v567_v47 = vld [vmem:[%s1738_s8 + $0x30] sm:$0xff]  ;;  %v568_v48 = vld [vmem:[%s1738_s8 + $0x38] sm:$0xff] }
 0x1d9   :  { %1278 = vmatprep.mubr.msk.bf16.mxu1 %vm267_vm2, %v346_v57  ;;  %v322_v1 = vrot.slane %v321_v52, 1  ;;  %v725_v42 = vpack.c.bf16 %v723_v41, %v722_v40  ;;  %v577_v45 = vpack.c.bf16 %v566_v44, %v565_v43  ;;  %v1391_v46 = vmov 0.0  }
 0x1da   :  { %v669_v61 = vsel %vm595_vm3, %v662_v55, %v661_v54  ;;  %v302_v63 = vadd.f32 %v301_v56, %v300_v50  ;;  %v306_v2 = vrot.slane %v305_v59, 2  ;;  %1279 = vmatmul.mubr.msk.bf16.gmra.mrb[12].mxu1 %vm267_vm2, %v347_v37  ;;  %v316_v6 = vadd.f32 %v315_v62, %v314_v49  ;;  %v720_v37 = vld [vmem:[%s1736_s6] sm:$0xff]  ;;  %1298 = vmatprep.subr.bf16.mxu1 %v1391_v46 }
 0x1db   :  { %v670_v0 = vsel %vm597_vm4, %v663_v58, %v669_v61  ;;  %v323_v9 = vadd.f32 %v322_v1, %v321_v52  ;;  %v724_v39 = vpack.c.bf16 %v721_v38, %v720_v37  ;;  %1299 = vmatpush3.bf16.msra.mxu1 %v577_v45  ;;  %v578_v49 = vpack.c.bf16 %v568_v48, %v567_v47  ;;  %v1169_v50 = vld [vmem:[%s1735_s5] ss:$0 sm:$0xff] }
 0x1dc   :  { %v332_v3 = vpack.c.bf16 %v302_v63, %v302_v63  ;;  %v671_v4 = vsel %vm599_vm5, %v664_v60, %v670_v0  ;;  %v307_v5 = vadd.f32 %v306_v2, %v305_v59  ;;  %v334_v16 = vpack.c.bf16 %v316_v6, %v316_v6  ;;  %1300 = vmatprep.subr.bf16.mxu1 %v1391_v46 }
 0x1dd   :  { %v335_v17 = vpack.c.bf16 %v323_v9, %v323_v9  ;;  %1302 = vmatprep.mubr.msk.bf16.mxu1 %vm1392_vm10, %v1391_v46 }
 0x1de   :  { %v665_v7 = vunpack.c.l.b16 %v332_v3  ;;  %v308_v10 = vrot.slane %v307_v5, 1  ;;  %v667_v20 = vunpack.c.l.b16 %v334_v16 }
 0x1df   :  { %v668_v21 = vunpack.c.l.b16 %v335_v17  ;;  %1301 = vmatpush3.bf16.msra.mxu1 %v578_v49 }
 0x1e0   :  { %v672_v11 = vsel %vm601_vm6, %v665_v7, %v671_v4  ;;  %v309_v12 = vadd.f32 %v308_v10, %v307_v5  ;;  %1306 = vmatprep.subr.bf16.mxu1 %v1391_v46 }
 0x1e2   :  { %v333_v18 = vpack.c.bf16 %v309_v12, %v309_v12 }
 0x1e4   :  { %v666_v19 = vunpack.c.l.b16 %v333_v18 }
 0x1e6   :  { %v673_v22 = vsel %vm603_vm7, %v666_v19, %v672_v11 }
 0x1e7   :  { %v674_v23 = vsel %vm605_vm8, %v667_v20, %v673_v22 }
 0x1e8   :  { %v1563_v24 = vsel %vm607_vm9, %v668_v21, %v674_v23 }
 0x29f   :  { %v1276_v25 = vpop.f32.mrb[8].mxu1 }
 0x2a0   :  { %v394_v26 = vpop.f32.mrb[9].mxu1 }
 0x2a1   :  { %v1277_v27 = vpop.f32.mrb[10].mxu1 }
 0x2a2   :  { %v426_v28 = vpack.c.bf16 %v1277_v27, %v1276_v25  ;;  %v397_v29 = vpop.f32.mrb[11].mxu1 }
 0x2a3   :  { %v425_v30 = vpack.c.bf16 %v397_v29, %v394_v26 }
 0x2a5   :  { %1282 = vmatprep.subr.bf16.mxu0 %v425_v30 }
 0x2a6   :  { %1283 = vmatpush3.bf16.msra.mxu0 %v425_v30 }
 0x2a7   :  { %1284 = vmatprep.subr.bf16.mxu0 %v426_v28 }
 0x2aa   :  { %1285 = vmatpush3.bf16.msra.mxu0 %v426_v28 }
 0x2ad   :  { %v1280_v31 = vpop.f32.mrb[12].mxu1 }
 0x2ae   :  { %v410_v32 = vpop.f32.mrb[13].mxu1 }
 0x2af   :  { %v1281_v33 = vpop.f32.mrb[14].mxu1 }
 0x2b0   :  { %v428_v34 = vpack.c.bf16 %v1281_v33, %v1280_v31  ;;  %v413_v35 = vpop.f32.mrb[15].mxu1 }
 0x2b1   :  { %v427_v36 = vpack.c.bf16 %v413_v35, %v410_v32 }
 0x2b3   :  { %1286 = vmatprep.subr.bf16.mxu0 %v427_v36 }
 0x2b4   :  { %1287 = vmatpush3.bf16.msra.mxu0 %v427_v36 }
 0x2b5   :  { %1288 = vmatprep.subr.bf16.mxu0 %v428_v34 }
 0x2b8   :  { %1289 = vmatpush3.bf16.msra.mxu0 %v428_v34 }
 0x2b9   :  { %1314 = vmatprep.subr.bf16.mxu0 %v724_v39 }
 0x2bb   :  { %1291 = vmatmul.mubr.msk.bf16.vlgmr.msra.gmra.mrb[8].mxu0 %vm92_vm0, %v1503_v13 }
 0x2bc   :  { %1294 = vmatprep.mubr.msk.bf16.mxu0 %vm92_vm0, %v1508_v14  ;;  %1315 = vmatpush3.bf16.msra.mxu0 %v724_v39 }
 0x2bd   :  { %1316 = vmatprep.subr.bf16.mxu0 %v725_v42 }
 0x2c0   :  { %1317 = vmatpush3.bf16.msra.mxu0 %v725_v42 }
 0x2c1   :  { %1342 = vmatprep.subr.bf16.mxu0 %v1391_v46 }
 0x2c3   :  { %1295 = vmatmul.mubr.msk.bf16.gmra.mrb[12].mxu0 %vm92_vm0, %v1517_v15 }
 0x38e   :  { %v1292_v51 = vpop.f32.mrb[8].mxu0 }
 0x38f   :  { %v479_v52 = vadd.f32 %v1292_v51, %v1169_v50  ;;  %v470_v53 = vpop.f32.mrb[9].mxu0 }
 0x390   :  { %v471_v54 = vadd.f32 %v1169_v50, %v470_v53  ;;  %v1293_v55 = vpop.f32.mrb[10].mxu0 }
 0x391   :  { %v503_v56 = vmax.f32 %v479_v52, 0.0  ;;  %v482_v57 = vadd.f32 %v1293_v55, %v1169_v50  ;;  %v473_v58 = vpop.f32.mrb[11].mxu0 }
 0x392   :  { %v501_v59 = vmax.f32 %v471_v54, 0.0  ;;  %v474_v60 = vadd.f32 %v1169_v50, %v473_v58 }
 0x393   :  { %v523_v61 = vsel %vm267_vm2, %v503_v56, 0.0  ;;  %v504_v62 = vmax.f32 %v482_v57, 0.0 }
 0x394   :  { %v524_v63 = vrot.slane %v523_v61, 4  ;;  %v509_v0 = vsel %vm267_vm2, %v501_v59, 0.0  ;;  %v502_v1 = vmax.f32 %v474_v60, 0.0 }
 0x395   :  { %v510_v2 = vrot.slane %v509_v0, 4  ;;  %v530_v3 = vsel %vm267_vm2, %v504_v62, 0.0  ;;  %v727_v4 = vpack.c.bf16 %v504_v62, %v503_v56 }
 0x396   :  { %v525_v5 = vadd.f32 %v524_v63, %v523_v61  ;;  %v531_v6 = vrot.slane %v530_v3, 4  ;;  %v516_v7 = vsel %vm267_vm2, %v502_v1, 0.0  ;;  %v726_v9 = vpack.c.bf16 %v502_v1, %v501_v59  ;;  %v1296_v10 = vpop.f32.mrb[12].mxu0 }
 0x397   :  { %v511_v11 = vadd.f32 %v510_v2, %v509_v0  ;;  %v517_v12 = vrot.slane %v516_v7, 4  ;;  %v495_v16 = vadd.f32 %v1296_v10, %v1169_v50  ;;  %v486_v17 = vpop.f32.mrb[13].mxu0 }
 0x398   :  { %v526_v18 = vrot.slane %v525_v5, 2  ;;  %v532_v19 = vadd.f32 %v531_v6, %v530_v3  ;;  %v487_v20 = vadd.f32 %v1169_v50, %v486_v17  ;;  %v1297_v21 = vpop.f32.mrb[14].mxu0  ;;  %1318 = vmatprep.mubr.msk.bf16.mxu0 %vm267_vm2, %v726_v9 }
 0x399   :  { %v512_v22 = vrot.slane %v511_v11, 2  ;;  %v518_v23 = vadd.f32 %v517_v12, %v516_v7  ;;  %v507_v25 = vmax.f32 %v495_v16, 0.0  ;;  %v498_v26 = vadd.f32 %v1297_v21, %v1169_v50  ;;  %v489_v27 = vpop.f32.mrb[15].mxu0  ;;  %1319 = vmatmul.mubr.msk.bf16.vlgmr.msra.gmra.mrb[16].mxu0 %vm267_vm2, %v727_v4 }
 0x39a   :  { %v527_v28 = vadd.f32 %v526_v18, %v525_v5  ;;  %v533_v29 = vrot.slane %v532_v19, 2  ;;  %v505_v30 = vmax.f32 %v487_v20, 0.0  ;;  %v490_v31 = vadd.f32 %v1169_v50, %v489_v27 }
 0x39b   :  { %v513_v32 = vadd.f32 %v512_v22, %v511_v11  ;;  %v519_v33 = vrot.slane %v518_v23, 2  ;;  %v551_v34 = vsel %vm267_vm2, %v507_v25, 0.0  ;;  %v508_v35 = vmax.f32 %v498_v26, 0.0 }
 0x39c   :  { %v528_v36 = vrot.slane %v527_v28, 1  ;;  %v534_v37 = vadd.f32 %v533_v29, %v532_v19  ;;  %v552_v38 = vrot.slane %v551_v34, 4  ;;  %v537_v39 = vsel %vm267_vm2, %v505_v30, 0.0 }
 0x39d   :  { %v514_v40 = vrot.slane %v513_v32, 1  ;;  %v520_v41 = vadd.f32 %v519_v33, %v518_v23  ;;  %v538_v42 = vrot.slane %v537_v39, 4  ;;  %v558_v43 = vsel %vm267_vm2, %v508_v35, 0.0 }
 0x39e   :  { %v529_v44 = vadd.f32 %v528_v36, %v527_v28  ;;  %v535_v45 = vrot.slane %v534_v37, 1  ;;  %v553_v47 = vadd.f32 %v552_v38, %v551_v34  ;;  %v559_v48 = vrot.slane %v558_v43, 4  ;;  %v325_v38 = vld [vmem:[%s1738_s8 + $0x8] sm:$0xff] }
 0x39f   :  { %v515_v49 = vadd.f32 %v514_v40, %v513_v32  ;;  %v521_v50 = vrot.slane %v520_v41, 1  ;;  %v539_v51 = vadd.f32 %v538_v42, %v537_v39  ;;  %v729_v52 = vpack.c.bf16 %v508_v35, %v507_v25 }
 0x3a0   :  { %v536_v53 = vadd.f32 %v535_v45, %v534_v37  ;;  %v554_v54 = vrot.slane %v553_v47, 2  ;;  %v560_v55 = vadd.f32 %v559_v48, %v558_v43  ;;  %v506_v59 = vmax.f32 %v490_v31, 0.0  ;;  %v324_v37 = vld [vmem:[%s1738_s8] sm:$0xff]  ;;  %v326_v45 = vld [vmem:[%s1738_s8 + $0x10] sm:$0xff] }
 0x3a1   :  { %v569_v56 = vpack.c.bf16 %v515_v49, %v515_v49  ;;  %v522_v57 = vadd.f32 %v521_v50, %v520_v41  ;;  %v540_v58 = vrot.slane %v539_v51, 2  ;;  %v571_v60 = vpack.c.bf16 %v529_v44, %v529_v44 }
 0x3a2   :  { %v572_v61 = vpack.c.bf16 %v536_v53, %v536_v53  ;;  %v561_v62 = vrot.slane %v560_v55, 2  ;;  %v555_v0 = vadd.f32 %v554_v54, %v553_v47  ;;  %v544_v2 = vsel %vm267_vm2, %v506_v59, 0.0  ;;  %v327_v47 = vld [vmem:[%s1738_s8 + $0x18] sm:$0xff] }
 0x3a3   :  { %v570_v63 = vpack.c.bf16 %v522_v57, %v522_v57  ;;  %v541_v1 = vadd.f32 %v540_v58, %v539_v51  ;;  %v545_v4 = vrot.slane %v544_v2, 4  ;;  %v587_v5 = vunpack.c.l.b16 %v569_v56 }
 0x3a4   :  { %v562_v3 = vadd.f32 %v561_v62, %v560_v55  ;;  %v728_v9 = vpack.c.bf16 %v506_v59, %v505_v30  ;;  %v589_v10 = vunpack.c.l.b16 %v571_v60  ;;  %v590_v12 = vunpack.c.l.b16 %v572_v61 }
 0x3a5   :  { %v588_v6 = vunpack.c.l.b16 %v570_v63  ;;  %v542_v7 = vrot.slane %v541_v1, 1  ;;  %v546_v11 = vadd.f32 %v545_v4, %v544_v2  ;;  %v556_v17 = vrot.slane %v555_v0, 1 }
 0x3a6   :  { %1322 = vmatprep.mubr.msk.bf16.mxu0 %vm267_vm2, %v728_v9  ;;  %v563_v20 = vrot.slane %v562_v3, 1  ;;  %v336_v43 = vpack.c.bf16 %v325_v38, %v324_v37  ;;  %v337_v48 = vpack.c.bf16 %v327_v47, %v326_v45  ;;  %v676_v49 = vpack.c.b16 %v1563_v24, %v1563_v24  ;;  %v1180_v9 = vld [vmem:[%s1737_s7] ss:$0 sm:$0xff] }
 0x3a7   :  { %v596_v16 = vsel %vm595_vm3, %v588_v6, %v587_v5  ;;  %v543_v18 = vadd.f32 %v542_v7, %v541_v1  ;;  %v547_v21 = vrot.slane %v546_v11, 2  ;;  %1323 = vmatmul.mubr.msk.bf16.gmra.mrb[20].mxu0 %vm267_vm2, %v729_v52  ;;  %v557_v26 = vadd.f32 %v556_v17, %v555_v0  ;;  %v950_v6 = vld [vmem:[%s1738_s8 + $0x58] sm:$0xff] }
 0x3a8   :  { %v598_v19 = vsel %vm597_vm4, %v589_v10, %v596_v16  ;;  %1346 = vmatprep.mubr.msk.bf16.mxu0 %vm1392_vm10, %v1391_v46  ;;  %v564_v28 = vadd.f32 %v563_v20, %v562_v3 }
 0x3a9   :  { %v573_v22 = vpack.c.bf16 %v543_v18, %v543_v18  ;;  %v600_v23 = vsel %vm599_vm5, %v590_v12, %v598_v19  ;;  %v548_v25 = vadd.f32 %v547_v21, %v546_v11  ;;  %v575_v32 = vpack.c.bf16 %v557_v26, %v557_v26 }
 0x3aa   :  { %v576_v33 = vpack.c.bf16 %v564_v28, %v564_v28 }
 0x3ab   :  { %v591_v27 = vunpack.c.l.b16 %v573_v22  ;;  %v549_v29 = vrot.slane %v548_v25, 1  ;;  %v593_v36 = vunpack.c.l.b16 %v575_v32 }
 0x3ac   :  { %v594_v39 = vunpack.c.l.b16 %v576_v33 }
 0x3ad   :  { %v602_v30 = vsel %vm601_vm6, %v591_v27, %v600_v23  ;;  %v550_v31 = vadd.f32 %v549_v29, %v548_v25 }
 0x3af   :  { %v574_v34 = vpack.c.bf16 %v550_v31, %v550_v31 }
 0x3b1   :  { %v592_v35 = vunpack.c.l.b16 %v574_v34 }
 0x3b3   :  { %v604_v40 = vsel %vm603_vm7, %v592_v35, %v602_v30 }
 0x3b4   :  { %v606_v41 = vsel %vm605_vm8, %v593_v36, %v604_v40 }
 0x3b5   :  { %v608_v42 = vsel %vm607_vm9, %v594_v39, %v606_v41 }
 0x3b6   :  { %v609_v44 = vpack.c.b16 %v608_v42, %v608_v42 }
 0x3b8   :  { %1303 = vmatmul.mubr.msk.bf16.vlgmr.msra.gmra.mrb[16].mxu1 %vm267_vm2, %v609_v44 }
 0x3b9   :  { %1307 = vmatpush3.bf16.msra.mxu1 %v336_v43  ;;  %1310 = vmatprep.mubr.msk.bf16.mxu1 %vm1392_vm10, %v1391_v46 }
 0x3ba   :  { %1308 = vmatprep.subr.bf16.mxu1 %v1391_v46 }
 0x3bd   :  { %1309 = vmatpush3.bf16.msra.mxu1 %v337_v48 }
 0x3c0   :  { %1311 = vmatmul.mubr.msk.bf16.vlgmr.msra.gmra.mrb[20].mxu1 %vm267_vm2, %v676_v49 }
 0x3c1   :  { %1334 = vmatprep.mubr.msk.bf16.mxu1 %vm92_vm0, %v1490_v8 }
 0x46c   :  { %v1320_v50 = vpop.f32.mrb[16].mxu0 }
 0x46d   :  { %v776_v51 = vpop.f32.mrb[17].mxu0 }
 0x46e   :  { %v1321_v52 = vpop.f32.mrb[18].mxu0 }
 0x46f   :  { %v808_v53 = vpack.c.bf16 %v1321_v52, %v1320_v50  ;;  %v779_v54 = vpop.f32.mrb[19].mxu0 }
 0x470   :  { %v807_v55 = vpack.c.bf16 %v779_v54, %v776_v51 }
 0x472   :  { %1326 = vmatprep.subr.bf16.mxu1 %v807_v55 }
 0x473   :  { %1327 = vmatpush3.bf16.msra.mxu1 %v807_v55 }
 0x474   :  { %1328 = vmatprep.subr.bf16.mxu1 %v808_v53 }
 0x477   :  { %1329 = vmatpush3.bf16.msra.mxu1 %v808_v53 }
 0x47a   :  { %v1324_v56 = vpop.f32.mrb[20].mxu0 }
 0x47b   :  { %v792_v57 = vpop.f32.mrb[21].mxu0 }
 0x47c   :  { %v1325_v58 = vpop.f32.mrb[22].mxu0 }
 0x47d   :  { %v810_v59 = vpack.c.bf16 %v1325_v58, %v1324_v56  ;;  %v795_v24 = vpop.f32.mrb[23].mxu0 }
 0x47e   :  { %v809_v60 = vpack.c.bf16 %v795_v24, %v792_v57 }
 0x480   :  { %1330 = vmatprep.subr.bf16.mxu1 %v809_v60 }
 0x481   :  { %1331 = vmatpush3.bf16.msra.mxu1 %v809_v60 }
 0x482   :  { %1332 = vmatprep.subr.bf16.mxu1 %v810_v59 }
 0x485   :  { %1333 = vmatpush3.bf16.msra.mxu1 %v810_v59 }
 0x488   :  { %1335 = vmatmul.mubr.msk.bf16.vlgmr.msra.gmra.mrb[24].mxu1 %vm92_vm0, %v1503_v13  ;;  %v947_v13 = vld [vmem:[%s1738_s8 + $0x40] sm:$0xff] }
 0x489   :  { %1338 = vmatprep.mubr.msk.bf16.mxu1 %vm92_vm0, %v1508_v14  ;;  %v948_v14 = vld [vmem:[%s1738_s8 + $0x48] sm:$0xff] }
 0x48a   :  { %v959_v5 = vpack.c.bf16 %v948_v14, %v947_v13 }
 0x48b   :  { %v647_v8 = vpop.f32.mrb[16].mxu1 }
 0x48c   :  { %v1304_v61 = vpop.f32.mrb[17].mxu1  ;;  %1343 = vmatpush3.bf16.msra.mxu0 %v959_v5 }
 0x48d   :  { %v650_v62 = vpop.f32.mrb[18].mxu1  ;;  %1344 = vmatprep.subr.bf16.mxu0 %v1391_v46 }
 0x48e   :  { %v1305_v63 = vpop.f32.mrb[19].mxu1 }
 0x490   :  { %1339 = vmatmul.mubr.msk.bf16.gmra.mrb[28].mxu1 %vm92_vm0, %v1517_v15  ;;  %v949_v15 = vld [vmem:[%s1738_s8 + $0x50] sm:$0xff] }
 0x491   :  { %v960_v7 = vpack.c.bf16 %v950_v6, %v949_v15 }
 0x493   :  { %v714_v0 = vpop.f32.mrb[20].mxu1  ;;  %1345 = vmatpush3.bf16.msra.mxu0 %v960_v7 }
 0x494   :  { %v1652_v1 = vadd.f32 %v714_v0, %v647_v8  ;;  %v1312_v2 = vpop.f32.mrb[21].mxu1  ;;  %1350 = vmatprep.subr.bf16.mxu0 %v1391_v46 }
 0x495   :  { %v717_v3 = vpop.f32.mrb[22].mxu1 }
 0x496   :  { %v1313_v4 = vpop.f32.mrb[23].mxu1 }
 0x55b   :  { %v1336_v10 = vpop.f32.mrb[24].mxu1 }
 0x55c   :  { %v861_v11 = vadd.f32 %v1336_v10, %v1180_v9  ;;  %v852_v12 = vpop.f32.mrb[25].mxu1 }
 0x55d   :  { %v853_v16 = vadd.f32 %v1180_v9, %v852_v12  ;;  %v1337_v17 = vpop.f32.mrb[26].mxu1 }
 0x55e   :  { %v885_v18 = vmax.f32 %v861_v11, 0.0  ;;  %v864_v19 = vadd.f32 %v1337_v17, %v1180_v9  ;;  %v855_v20 = vpop.f32.mrb[27].mxu1 }
 0x55f   :  { %v883_v21 = vmax.f32 %v853_v16, 0.0  ;;  %v856_v22 = vadd.f32 %v1180_v9, %v855_v20 }
 0x560   :  { %v905_v23 = vsel %vm267_vm2, %v885_v18, 0.0  ;;  %v886_v25 = vmax.f32 %v864_v19, 0.0 }
 0x561   :  { %v906_v26 = vrot.slane %v905_v23, 4  ;;  %v891_v27 = vsel %vm267_vm2, %v883_v21, 0.0  ;;  %v884_v28 = vmax.f32 %v856_v22, 0.0 }
 0x562   :  { %v892_v29 = vrot.slane %v891_v27, 4  ;;  %v912_v30 = vsel %vm267_vm2, %v886_v25, 0.0 }
 0x563   :  { %v907_v31 = vadd.f32 %v906_v26, %v905_v23  ;;  %v913_v32 = vrot.slane %v912_v30, 4  ;;  %v898_v33 = vsel %vm267_vm2, %v884_v28, 0.0  ;;  %v1340_v34 = vpop.f32.mrb[28].mxu1 }
 0x564   :  { %v893_v35 = vadd.f32 %v892_v29, %v891_v27  ;;  %v899_v36 = vrot.slane %v898_v33, 4  ;;  %v877_v37 = vadd.f32 %v1340_v34, %v1180_v9  ;;  %v868_v38 = vpop.f32.mrb[29].mxu1 }
 0x565   :  { %v908_v39 = vrot.slane %v907_v31, 2  ;;  %v914_v40 = vadd.f32 %v913_v32, %v912_v30  ;;  %v869_v41 = vadd.f32 %v1180_v9, %v868_v38  ;;  %v1341_v42 = vpop.f32.mrb[30].mxu1 }
 0x566   :  { %v894_v43 = vrot.slane %v893_v35, 2  ;;  %v900_v44 = vadd.f32 %v899_v36, %v898_v33  ;;  %v889_v45 = vmax.f32 %v877_v37, 0.0  ;;  %v880_v47 = vadd.f32 %v1341_v42, %v1180_v9  ;;  %v871_v48 = vpop.f32.mrb[31].mxu1 }
 0x567   :  { %v909_v49 = vadd.f32 %v908_v39, %v907_v31  ;;  %v915_v50 = vrot.slane %v914_v40, 2  ;;  %v887_v51 = vmax.f32 %v869_v41, 0.0  ;;  %v872_v52 = vadd.f32 %v1180_v9, %v871_v48 }
 0x568   :  { %v895_v53 = vadd.f32 %v894_v43, %v893_v35  ;;  %v901_v54 = vrot.slane %v900_v44, 2  ;;  %v933_v55 = vsel %vm267_vm2, %v889_v45, 0.0  ;;  %v890_v56 = vmax.f32 %v880_v47, 0.0 }
 0x569   :  { %v910_v57 = vrot.slane %v909_v49, 1  ;;  %v916_v58 = vadd.f32 %v915_v50, %v914_v40  ;;  %v934_v59 = vrot.slane %v933_v55, 4  ;;  %v919_v24 = vsel %vm267_vm2, %v887_v51, 0.0 }
 0x56a   :  { %v896_v60 = vrot.slane %v895_v53, 1  ;;  %v902_v8 = vadd.f32 %v901_v54, %v900_v44  ;;  %v920_v61 = vrot.slane %v919_v24, 4  ;;  %v940_v62 = vsel %vm267_vm2, %v890_v56, 0.0 }
 0x56b   :  { %v911_v63 = vadd.f32 %v910_v57, %v909_v49  ;;  %v917_v0 = vrot.slane %v916_v58, 1  ;;  %v935_v2 = vadd.f32 %v934_v59, %v933_v55  ;;  %v941_v3 = vrot.slane %v940_v62, 4  ;;  %v1080_v57 = vld [vmem:[%s1742_s12] sm:$0xff] }
 0x56c   :  { %v897_v4 = vadd.f32 %v896_v60, %v895_v53  ;;  %v903_v13 = vrot.slane %v902_v8, 1  ;;  %v921_v14 = vadd.f32 %v920_v61, %v919_v24  ;;  %v888_v5 = vmax.f32 %v872_v52, 0.0  ;;  %v1082_v24 = vld [vmem:[%s1742_s12 + $0x10] sm:$0xff]  ;;  %v1083_v60 = vld [vmem:[%s1742_s12 + $0x18] sm:$0xff] }
 0x56d   :  { %v918_v15 = vadd.f32 %v917_v0, %v916_v58  ;;  %v936_v6 = vrot.slane %v935_v2, 2  ;;  %v942_v7 = vadd.f32 %v941_v3, %v940_v62  ;;  %v953_v16 = vpack.c.bf16 %v911_v63, %v911_v63  ;;  %v1081_v58 = vld [vmem:[%s1742_s12 + $0x8] sm:$0xff]  ;;  %v1186_v62 = vld [vmem:[%s1739_s9] ss:$0 sm:$0xff] }
 0x56e   :  { %v951_v9 = vpack.c.bf16 %v897_v4, %v897_v4  ;;  %v904_v10 = vadd.f32 %v903_v13, %v902_v8  ;;  %v922_v11 = vrot.slane %v921_v14, 2  ;;  %v926_v12 = vsel %vm267_vm2, %v888_v5, 0.0 }
 0x56f   :  { %v954_v17 = vpack.c.bf16 %v918_v15, %v918_v15  ;;  %v937_v18 = vadd.f32 %v936_v6, %v935_v2  ;;  %v943_v19 = vrot.slane %v942_v7, 2  ;;  %v927_v22 = vrot.slane %v926_v12, 4 }
 0x570   :  { %v952_v20 = vpack.c.bf16 %v904_v10, %v904_v10  ;;  %v923_v21 = vadd.f32 %v922_v11, %v921_v14  ;;  %v969_v25 = vunpack.c.l.b16 %v951_v9  ;;  %v971_v29 = vunpack.c.l.b16 %v953_v16 }
 0x571   :  { %v944_v23 = vadd.f32 %v943_v19, %v942_v7  ;;  %v928_v28 = vadd.f32 %v927_v22, %v926_v12  ;;  %v972_v30 = vunpack.c.l.b16 %v954_v17  ;;  %v938_v31 = vrot.slane %v937_v18, 1 }
 0x572   :  { %v970_v26 = vunpack.c.l.b16 %v952_v20  ;;  %v924_v27 = vrot.slane %v923_v21, 1  ;;  %v1084_v59 = vpack.c.bf16 %v1081_v58, %v1080_v57  ;;  %v1085_v8 = vpack.c.bf16 %v1083_v60, %v1082_v24 }
 0x573   :  { %v945_v34 = vrot.slane %v944_v23, 1  ;;  %v929_v35 = vrot.slane %v928_v28, 2  ;;  %v939_v40 = vadd.f32 %v938_v31, %v937_v18 }
 0x574   :  { %v977_v32 = vsel %vm595_vm3, %v970_v26, %v969_v25  ;;  %v925_v33 = vadd.f32 %v924_v27, %v923_v21 }
 0x575   :  { %v978_v36 = vsel %vm597_vm4, %v971_v29, %v977_v32  ;;  %v930_v39 = vadd.f32 %v929_v35, %v928_v28  ;;  %v946_v42 = vadd.f32 %v945_v34, %v944_v23  ;;  %v957_v47 = vpack.c.bf16 %v939_v40, %v939_v40  ;;  %v1187_v28 = vld [vmem:[%s1740_s10] ss:$0 sm:$0xff]  ;;  %s1367_s10 = scalar_lea.vmem %s1145_s17, 128 }
 0x576   :  { %v955_v37 = vpack.c.bf16 %v925_v33, %v925_v33  ;;  %v979_v38 = vsel %vm599_vm5, %v972_v30, %v978_v36  ;;  %v1188_v30 = vld [vmem:[%s1741_s11] ss:$0 sm:$0xff]  ;;  %p1368_p0 = scmp.ne.s32.totalorder %s1145_s17, %s1367_s10  ;;  %p1373_p2 = scmp.lt.s32.totalorder %s1367_s10, %s1367_s10 }
 0x577   :  { %v931_v43 = vrot.slane %v930_v39, 1  ;;  %v958_v48 = vpack.c.bf16 %v946_v42, %v946_v42  ;;  %v975_v51 = vunpack.c.l.b16 %v957_v47  ;;  %v1189_v35 = vld [vmem:[%s1743_s13] ss:$0 sm:$0xff] }
 0x578   :  { %v973_v41 = vunpack.c.l.b16 %v955_v37  ;;  %p1374_p3 = por %p1373_p2, %p1372_p1 }
 0x579   :  { %v932_v45 = vadd.f32 %v931_v43, %v930_v39  ;;  %v976_v52 = vunpack.c.l.b16 %v958_v48 }
 0x57a   :  { %v980_v44 = vsel %vm601_vm6, %v973_v41, %v979_v38  ;;  %p1375_p4 = pnand %p1374_p3, %p1368_p0 }
 0x57b   :  { %v956_v49 = vpack.c.bf16 %v932_v45, %v932_v45 }
 0x57d   :  { %v974_v50 = vunpack.c.l.b16 %v956_v49 }
 0x57f   :  { %v981_v53 = vsel %vm603_vm7, %v974_v50, %v980_v44 }
 0x580   :  { %v982_v54 = vsel %vm605_vm8, %v975_v51, %v981_v53 }
 0x581   :  { %v983_v55 = vsel %vm607_vm9, %v976_v52, %v982_v54 }
 0x582   :  { %v984_v56 = vpack.c.b16 %v983_v55, %v983_v55 }
 0x584   :  { %1347 = vmatmul.mubr.msk.bf16.vlgmr.msra.gmra.mrb[24].mxu0 %vm267_vm2, %v984_v56 }
 0x585   :  { %1354 = vmatprep.mubr.msk.bf16.mxu0 %vm1392_vm10, %v1391_v46  ;;  %1351 = vmatpush3.bf16.msra.mxu0 %v1084_v59 }
 0x586   :  { %1352 = vmatprep.subr.bf16.mxu0 %v1391_v46 }
 0x589   :  { %1353 = vmatpush3.bf16.msra.mxu0 %v1085_v8 }
 0x657   :  { %v1022_v61 = vpop.f32.mrb[24].mxu0 }
 0x658   :  { %v1028_v63 = vadd.f32 %v1022_v61, %v1652_v1  ;;  %v1348_v0 = vpop.f32.mrb[25].mxu0 }
 0x659   :  { %v1025_v2 = vpop.f32.mrb[26].mxu0 }
 0x65a   :  { %v1036_v3 = vadd.f32 %v1186_v62, %v1028_v63  ;;  %v1349_v4 = vpop.f32.mrb[27].mxu0 }
 0x65c   :  { %v1037_v13 = vsel %vm267_vm2, %v1036_v3, 0.0  ;;  %v1046_v14 = vmul.f32 %v1036_v3, %v1036_v3 }
 0x65d   :  { %v1038_v5 = vrot.slane %v1037_v13, 4 }
 0x65e   :  { %v1047_v15 = vsel %vm267_vm2, %v1046_v14, 0.0 }
 0x65f   :  { %v1039_v6 = vadd.f32 %v1038_v5, %v1037_v13  ;;  %v1048_v46 = vrot.slane %v1047_v15, 4 }
 0x661   :  { %v1040_v7 = vrot.slane %v1039_v6, 2  ;;  %v1049_v9 = vadd.f32 %v1048_v46, %v1047_v15 }
 0x663   :  { %v1041_v10 = vadd.f32 %v1040_v7, %v1039_v6  ;;  %v1050_v11 = vrot.slane %v1049_v9, 2 }
 0x665   :  { %v1042_v12 = vrot.slane %v1041_v10, 1  ;;  %v1051_v16 = vadd.f32 %v1050_v11, %v1049_v9 }
 0x667   :  { %v1043_v17 = vadd.f32 %v1042_v12, %v1041_v10  ;;  %v1052_v1 = vrot.slane %v1051_v16, 1 }
 0x669   :  { %v1045_v18 = vmul.f32 0.125, %v1043_v17  ;;  %v1053_v19 = vadd.f32 %v1052_v1, %v1051_v16 }
 0x66b   :  { %v1054_v20 = vmul.f32 0.125, %v1053_v19  ;;  %v1055_v21 = vmul.f32 %v1045_v18, %v1045_v18  ;;  %v1058_v26 = vsub.f32 %v1036_v3, %v1045_v18 }
 0x66d   :  { %v1056_v22 = vsub.f32 %v1054_v20, %v1055_v21 }
 0x66f   :  { %v1057_v23 = vmax.f32 %v1056_v22, 0.0 }
 0x671   :  { %v1059_v25 = vadd.f32 1e-05, %v1057_v23 }
 0x673   :  { %1365 = vrsqrt.f32 %v1059_v25 }
 0x67d   :  { %v1366_v27 = vpop.eup %1365 }
 0x67e   :  { %v1061_v29 = vmul.f32 %v1366_v27, %v1058_v26 }
 0x680   :  { %v1069_v31 = vmul.f32 %v1187_v28, %v1061_v29 }
 0x682   :  { %v1077_v32 = vadd.f32 %v1188_v30, %v1069_v31 }
 0x684   :  { %v1078_v33 = vmax.f32 %v1077_v32, 0.0 }
 0x686   :  { %v1079_v34 = vpack.c.bf16 %v1078_v33, %v1078_v33 }
 0x688   :  { %1355 = vmatmul.mubr.msk.bf16.vlgmr.msra.gmra.mrb[28].mxu0 %vm267_vm2, %v1079_v34 }
 0x75b   :  { %v1130_v36 = vpop.f32.mrb[28].mxu0 }
 0x75c   :  { %v1131_v37 = vadd.f32 %v1189_v35, %v1130_v36  ;;  %v1356_v38 = vpop.f32.mrb[29].mxu0 }
 0x75d   :  { %v1133_v39 = vpop.f32.mrb[30].mxu0 }
 0x75e   :  { %v1357_v40 = vpop.f32.mrb[31].mxu0  ;;  %1137 = vst.msk [vmem:[#allocation2] sm:$0xff] %vm1136_vm11, %v1131_v37 }
 0x75f   :  { %1378 = shalt.err (!%p1375_p4)
}
 0x760   :  { %s1379_s13 = scalar_lea.hbm %s1744_s14, 128 }
 0x761   :  { %p1380_p5 = scmp.ne.s32.totalorder %s1744_s14, %s1379_s13  ;;  %p1383_p6 = scmp.lt.u32.totalorder %s1379_s13, %s1744_s14 }
 0x763   :  { %p1385_p7 = pnand %p1383_p6, %p1380_p5 }
 0x765   :  { %1388 = shalt.err (!%p1385_p7)
}
 0x766   :  { %1147 = dma.vmem_to_hbm [thread:$0]  %s1145_s17, 128, %s1744_s14, [#allocation3]  }
 0x767   :  { %1389 = dma.done.wait [#allocation3], 128  }
 0x768   :  { %1390 = vsyncadd [#allocation3], 4294967168 }
 0x769   :  { %1151 = vsyncpa [#allocation3], 1 }

</bundles_post_ra>
